<compile_context>
chip_gen: v5e
topology: v5e:2x2
jax: 0.10.0
libtpu: 0.0.40
codegen_flags: <defaults>
</compile_context>

<pallas_src>
import functools

import jax
import jax.numpy as jnp
from jax.experimental import pallas as pl
from jax.experimental.pallas import tpu as pltpu

_H1 = 64
_H2 = 128
_ROW_ALIGN = 16  # safe sublane multiple for bf16-packed x tiles


def _round_up(n, m):
    return ((n + m - 1) // m) * m


def _cdiv(a, b):
    return -(-a // b)


def qnetwork_kernel(x_ref,
                    w1_ref, b1_ref,
                    w2_ref, b2_ref,
                    w3_ref, b3_ref,
                    w4_ref, b4_ref,
                    o_ref):
    # x and weights are already bf16; MXU accumulates in f32.
    # Bias add + ReLU in f32 on the VPU (v5e has no bf16 VPU).
    x = x_ref[...]
    h = jnp.dot(x, w1_ref[...], preferred_element_type=jnp.float32) + b1_ref[...]
    h = jnp.maximum(h, 0.0)
    h = jnp.dot(h.astype(jnp.bfloat16), w2_ref[...],
                preferred_element_type=jnp.float32) + b2_ref[...]
    h = jnp.maximum(h, 0.0)
    h = jnp.dot(h.astype(jnp.bfloat16), w3_ref[...],
                preferred_element_type=jnp.float32) + b3_ref[...]
    h = jnp.maximum(h, 0.0)
    out = jnp.dot(h.astype(jnp.bfloat16), w4_ref[...],
                  preferred_element_type=jnp.float32) + b4_ref[...]
    o_ref[...] = out.astype(o_ref.dtype)


def prepare_params(params):
    """One-time cast to kernel layouts: weights bf16 (in, out), biases f32 (1, out).

    Call once (e.g. after init / after loading a checkpoint), NOT per forward.
    Accepts PyTorch-style (out,) biases and reshapes them to (1, out).
    """
    prepped = {}
    for i in range(1, 5):
        prepped[f"w{i}"] = jnp.asarray(params[f"w{i}"], jnp.bfloat16)
        prepped[f"b{i}"] = jnp.asarray(params[f"b{i}"], jnp.float32).reshape(1, -1)
    return prepped


@functools.partial(jax.jit, static_argnames=("tile_b",))
def qnetwork_forward(x, params, *, tile_b=4096):
    """x: (B, obs_dims) float32. params: prepare_params() output (bf16 W, f32 (1,out) b)."""
    batch, obs_dims = x.shape
    h1 = params["w1"].shape[1]
    h2 = params["w2"].shape[1]
    action_dims = params["w4"].shape[1]

    # Grid-step count: amortize per-step overhead with big tiles, avoid a whole
    # wasted step for ragged batches, and keep >=2 steps so v7x megacore can
    # shard the "parallel" batch axis across both TensorCores.
    n_steps = max(_cdiv(batch, tile_b), 1)
    if n_steps == 1 and batch >= 2 * _ROW_ALIGN:
        n_steps = 2
    tile = _round_up(_cdiv(batch, n_steps), _ROW_ALIGN)
    b_pad = tile * n_steps

    # Cast x once to bf16 (halves input DMA); pad only the batch axis if needed.
    # Padded rows are zeros -> garbage in padded output rows, sliced off below.
    xp = x.astype(jnp.bfloat16)
    if b_pad != batch:
        xp = jnp.pad(xp, ((0, b_pad - batch), (0, 0)))

    def resident(shape):
        # Constant block index -> weights/biases fetched once, stay in VMEM.
        return pl.BlockSpec(shape, lambda i: (0, 0))

    out = pl.pallas_call(
        qnetwork_kernel,
        out_shape=jax.ShapeDtypeStruct((b_pad, action_dims), jnp.float32),
        grid_spec=pltpu.PrefetchScalarGridSpec(
            num_scalar_prefetch=0,
            grid=(n_steps,),
            in_specs=[
                # Last block dim equals the full array dim -> legal without padding.
                pl.BlockSpec((tile, obs_dims), lambda i: (i, 0)),
                resident((obs_dims, h1)), resident((1, h1)),
                resident((h1, h2)),       resident((1, h2)),
                resident((h2, h2)),       resident((1, h2)),
                resident((h2, action_dims)), resident((1, action_dims)),
            ],
            # Narrow HBM output: (tile, action_dims), no 128-lane padding.
            out_specs=pl.BlockSpec((tile, action_dims), lambda i: (i, 0)),
        ),
        compiler_params=pltpu.CompilerParams(
            dimension_semantics=("parallel",),   # megacore sharding on v7x
            vmem_limit_bytes=32 << 20,           # headroom for large tiles (ok on v5e/v6e/v7x)
        ),
    )(xp, params["w1"], params["b1"], params["w2"], params["b2"],
      params["w3"], params["b3"], params["w4"], params["b4"])

    return out[:batch]


def init_params(key, obs_dims, action_dims):
    """Deterministic init mimicking PyTorch nn.Linear (uniform +/- 1/sqrt(fan_in))."""
    dims = [(obs_dims, _H1), (_H1, _H2), (_H2, _H2), (_H2, action_dims)]
    params = {}
    for i, (fin, fout) in enumerate(dims, start=1):
        key, kw, kb = jax.random.split(key, 3)
        bound = 1.0 / jnp.sqrt(jnp.float32(fin))
        params[f"w{i}"] = jax.random.uniform(
            kw, (fin, fout), jnp.float32, minval=-bound, maxval=bound)
        params[f"b{i}"] = jax.random.uniform(
            kb, (1, fout), jnp.float32, minval=-bound, maxval=bound)
    return params


def reference_forward_f32(x, params):
    h = jnp.maximum(x @ params["w1"] + params["b1"], 0.0)
    h = jnp.maximum(h @ params["w2"] + params["b2"], 0.0)
    h = jnp.maximum(h @ params["w3"] + params["b3"], 0.0)
    return h @ params["w4"] + params["b4"]


def reference_forward_bf16(x, params):
    """Reference matching the kernel's numerics (bf16 operands, f32 accumulate)."""
    def mm(a, w):
        return jnp.dot(a.astype(jnp.bfloat16), w.astype(jnp.bfloat16),
                       preferred_element_type=jnp.float32)
    h = jnp.maximum(mm(x, params["w1"]) + params["b1"], 0.0)
    h = jnp.maximum(mm(h, params["w2"]) + params["b2"], 0.0)
    h = jnp.maximum(mm(h, params["w3"]) + params["b3"], 0.0)
    return mm(h, params["w4"]) + params["b4"]


# TODO(synk): save_params/load_params (torch.save/torch.load) are host-side I/O,
# no Pallas equivalent — handle with ordinary Python/NumPy checkpointing.


if __name__ == "__main__":
    key = jax.random.PRNGKey(0)
    obs_dims, action_dims, batch = 4, 2, 32

    key, kx = jax.random.split(key)
    params = init_params(key, obs_dims, action_dims)
    prepped = prepare_params(params)          # one-time layout/cast prep
    x = jax.random.normal(kx, (batch, obs_dims), jnp.float32)

    out = qnetwork_forward(x, prepped)
    jax.block_until_ready(out)

    assert out.shape == (batch, action_dims)
    # Tight check against a reference with identical (bf16-operand) numerics.
    assert jnp.allclose(out, reference_forward_bf16(x, params), atol=2e-3, rtol=2e-3)
    # Loose check against the pure f32 PyTorch-equivalent math.
    assert jnp.allclose(out, reference_forward_f32(x, params), atol=1e-1, rtol=1e-1)

    print("KERNEL_OK")
</pallas_src>

<mosaic_0001>
module attributes {stable_mosaic.version = 11 : i64} {
  func.func @qnetwork_kernel(%arg0: i32, %arg1: memref<16x4xbf16, #tpu.memory_space<vmem>>, %arg2: memref<4x64xbf16, #tpu.memory_space<vmem>>, %arg3: memref<1x64xf32, #tpu.memory_space<vmem>>, %arg4: memref<64x128xbf16, #tpu.memory_space<vmem>>, %arg5: memref<1x128xf32, #tpu.memory_space<vmem>>, %arg6: memref<128x128xbf16, #tpu.memory_space<vmem>>, %arg7: memref<1x128xf32, #tpu.memory_space<vmem>>, %arg8: memref<128x2xbf16, #tpu.memory_space<vmem>>, %arg9: memref<1x2xf32, #tpu.memory_space<vmem>>, %arg10: memref<16x2xf32, #tpu.memory_space<vmem>>) attributes {dimension_semantics = [#tpu.dimension_semantics<parallel>], iteration_bounds = array<i64: 2>, scalar_prefetch = 0 : i64, scratch_operands = 0 : i64, tpu.core_type = #tpu.core_type<tc>, window_params = [{transform_indices = @transform_0, window_bounds = array<i64: 16, 4>}, {pipeline_mode = #tpu.pipeline_mode<synchronous>, transform_indices = @transform_1, window_bounds = array<i64: 4, 64>}, {pipeline_mode = #tpu.pipeline_mode<synchronous>, transform_indices = @transform_2, window_bounds = array<i64: 1, 64>}, {pipeline_mode = #tpu.pipeline_mode<synchronous>, transform_indices = @transform_3, window_bounds = array<i64: 64, 128>}, {pipeline_mode = #tpu.pipeline_mode<synchronous>, transform_indices = @transform_4, window_bounds = array<i64: 1, 128>}, {pipeline_mode = #tpu.pipeline_mode<synchronous>, transform_indices = @transform_5, window_bounds = array<i64: 128, 128>}, {pipeline_mode = #tpu.pipeline_mode<synchronous>, transform_indices = @transform_6, window_bounds = array<i64: 1, 128>}, {pipeline_mode = #tpu.pipeline_mode<synchronous>, transform_indices = @transform_7, window_bounds = array<i64: 128, 2>}, {pipeline_mode = #tpu.pipeline_mode<synchronous>, transform_indices = @transform_8, window_bounds = array<i64: 1, 2>}, {transform_indices = @transform_9, window_bounds = array<i64: 16, 2>}]} {
    %c0 = arith.constant 0 : index
    %c0_0 = arith.constant 0 : index
    %0 = vector.load %arg1[%c0, %c0_0] : memref<16x4xbf16, #tpu.memory_space<vmem>>, vector<16x4xbf16>
    %c0_1 = arith.constant 0 : index
    %c0_2 = arith.constant 0 : index
    %1 = vector.load %arg2[%c0_1, %c0_2] : memref<4x64xbf16, #tpu.memory_space<vmem>>, vector<4x64xbf16>
    %cst = arith.constant dense<0.000000e+00> : vector<16x64xf32>
    %2 = tpu.matmul %0, %1, %cst {dimension_numbers = #tpu.dot_dimension_numbers<[1], [0], [0], [1], [0, 0, 1, 1], [], []>} : vector<16x4xbf16>, vector<4x64xbf16>, vector<16x64xf32> -> vector<16x64xf32>
    %c0_3 = arith.constant 0 : index
    %c0_4 = arith.constant 0 : index
    %3 = vector.load %arg3[%c0_3, %c0_4] : memref<1x64xf32, #tpu.memory_space<vmem>>, vector<1x64xf32>
    %4 = vector.broadcast %3 : vector<1x64xf32> to vector<16x64xf32>
    %5 = arith.addf %2, %4 : vector<16x64xf32>
    %cst_5 = arith.constant 0.000000e+00 : f32
    %6 = vector.broadcast %cst_5 : f32 to vector<16x64xf32>
    %7 = arith.maximumf %5, %6 : vector<16x64xf32>
    %8 = arith.truncf %7 : vector<16x64xf32> to vector<16x64xbf16>
    %c0_6 = arith.constant 0 : index
    %c0_7 = arith.constant 0 : index
    %9 = vector.load %arg4[%c0_6, %c0_7] : memref<64x128xbf16, #tpu.memory_space<vmem>>, vector<64x128xbf16>
    %cst_8 = arith.constant dense<0.000000e+00> : vector<16x128xf32>
    %10 = tpu.matmul %8, %9, %cst_8 {dimension_numbers = #tpu.dot_dimension_numbers<[1], [0], [0], [1], [0, 0, 1, 1], [], []>} : vector<16x64xbf16>, vector<64x128xbf16>, vector<16x128xf32> -> vector<16x128xf32>
    %c0_9 = arith.constant 0 : index
    %c0_10 = arith.constant 0 : index
    %11 = vector.load %arg5[%c0_9, %c0_10] : memref<1x128xf32, #tpu.memory_space<vmem>>, vector<1x128xf32>
    %12 = vector.broadcast %11 : vector<1x128xf32> to vector<16x128xf32>
    %13 = arith.addf %10, %12 : vector<16x128xf32>
    %cst_11 = arith.constant 0.000000e+00 : f32
    %14 = vector.broadcast %cst_11 : f32 to vector<16x128xf32>
    %15 = arith.maximumf %13, %14 : vector<16x128xf32>
    %16 = arith.truncf %15 : vector<16x128xf32> to vector<16x128xbf16>
    %c0_12 = arith.constant 0 : index
    %c0_13 = arith.constant 0 : index
    %17 = vector.load %arg6[%c0_12, %c0_13] : memref<128x128xbf16, #tpu.memory_space<vmem>>, vector<128x128xbf16>
    %cst_14 = arith.constant dense<0.000000e+00> : vector<16x128xf32>
    %18 = tpu.matmul %16, %17, %cst_14 {dimension_numbers = #tpu.dot_dimension_numbers<[1], [0], [0], [1], [0, 0, 1, 1], [], []>} : vector<16x128xbf16>, vector<128x128xbf16>, vector<16x128xf32> -> vector<16x128xf32>
    %c0_15 = arith.constant 0 : index
    %c0_16 = arith.constant 0 : index
    %19 = vector.load %arg7[%c0_15, %c0_16] : memref<1x128xf32, #tpu.memory_space<vmem>>, vector<1x128xf32>
    %20 = vector.broadcast %19 : vector<1x128xf32> to vector<16x128xf32>
    %21 = arith.addf %18, %20 : vector<16x128xf32>
    %cst_17 = arith.constant 0.000000e+00 : f32
    %22 = vector.broadcast %cst_17 : f32 to vector<16x128xf32>
    %23 = arith.maximumf %21, %22 : vector<16x128xf32>
    %24 = arith.truncf %23 : vector<16x128xf32> to vector<16x128xbf16>
    %c0_18 = arith.constant 0 : index
    %c0_19 = arith.constant 0 : index
    %25 = vector.load %arg8[%c0_18, %c0_19] : memref<128x2xbf16, #tpu.memory_space<vmem>>, vector<128x2xbf16>
    %cst_20 = arith.constant dense<0.000000e+00> : vector<16x2xf32>
    %26 = tpu.matmul %24, %25, %cst_20 {dimension_numbers = #tpu.dot_dimension_numbers<[1], [0], [0], [1], [0, 0, 1, 1], [], []>} : vector<16x128xbf16>, vector<128x2xbf16>, vector<16x2xf32> -> vector<16x2xf32>
    %c0_21 = arith.constant 0 : index
    %c0_22 = arith.constant 0 : index
    %27 = vector.load %arg9[%c0_21, %c0_22] : memref<1x2xf32, #tpu.memory_space<vmem>>, vector<1x2xf32>
    %28 = vector.broadcast %27 : vector<1x2xf32> to vector<16x2xf32>
    %29 = arith.addf %26, %28 : vector<16x2xf32>
    %c0_23 = arith.constant 0 : index
    %c0_24 = arith.constant 0 : index
    %30 = vector.load %arg10[%c0_23, %c0_24] : memref<16x2xf32, #tpu.memory_space<vmem>>, vector<16x2xf32>
    tpu.vector_store %arg10[%c0_23, %c0_24], %29 {strides = array<i32>} : memref<16x2xf32, #tpu.memory_space<vmem>>, vector<16x2xf32>,
    return
  }
  func.func @transform_0(%arg0: i32) -> (i32, i32) {
    %c0_i32 = arith.constant 0 : i32
    %c0_i32_0 = arith.constant 0 : i32
    return %arg0, %c0_i32 : i32, i32
  }
  func.func @transform_1(%arg0: i32) -> (i32, i32) {
    %c0_i32 = arith.constant 0 : i32
    %c0_i32_0 = arith.constant 0 : i32
    %c0_i32_1 = arith.constant 0 : i32
    return %c0_i32, %c0_i32_0 : i32, i32
  }
  func.func @transform_2(%arg0: i32) -> (i32, i32) {
    %c0_i32 = arith.constant 0 : i32
    %c0_i32_0 = arith.constant 0 : i32
    %c0_i32_1 = arith.constant 0 : i32
    return %c0_i32, %c0_i32_0 : i32, i32
  }
  func.func @transform_3(%arg0: i32) -> (i32, i32) {
    %c0_i32 = arith.constant 0 : i32
    %c0_i32_0 = arith.constant 0 : i32
    %c0_i32_1 = arith.constant 0 : i32
    return %c0_i32, %c0_i32_0 : i32, i32
  }
  func.func @transform_4(%arg0: i32) -> (i32, i32) {
    %c0_i32 = arith.constant 0 : i32
    %c0_i32_0 = arith.constant 0 : i32
    %c0_i32_1 = arith.constant 0 : i32
    return %c0_i32, %c0_i32_0 : i32, i32
  }
  func.func @transform_5(%arg0: i32) -> (i32, i32) {
    %c0_i32 = arith.constant 0 : i32
    %c0_i32_0 = arith.constant 0 : i32
    %c0_i32_1 = arith.constant 0 : i32
    return %c0_i32, %c0_i32_0 : i32, i32
  }
  func.func @transform_6(%arg0: i32) -> (i32, i32) {
    %c0_i32 = arith.constant 0 : i32
    %c0_i32_0 = arith.constant 0 : i32
    %c0_i32_1 = arith.constant 0 : i32
    return %c0_i32, %c0_i32_0 : i32, i32
  }
  func.func @transform_7(%arg0: i32) -> (i32, i32) {
    %c0_i32 = arith.constant 0 : i32
    %c0_i32_0 = arith.constant 0 : i32
    %c0_i32_1 = arith.constant 0 : i32
    return %c0_i32, %c0_i32_0 : i32, i32
  }
  func.func @transform_8(%arg0: i32) -> (i32, i32) {
    %c0_i32 = arith.constant 0 : i32
    %c0_i32_0 = arith.constant 0 : i32
    %c0_i32_1 = arith.constant 0 : i32
    return %c0_i32, %c0_i32_0 : i32, i32
  }
  func.func @transform_9(%arg0: i32) -> (i32, i32) {
    %c0_i32 = arith.constant 0 : i32
    %c0_i32_0 = arith.constant 0 : i32
    return %arg0, %c0_i32 : i32, i32
  }
}

</mosaic_0001>

<bundles_post_ra>
// kernel: qnetwork_forward.1
= control target key start
LH: loop header
LB: loop body
LE: loop exit
PB: predicated region body
PF: predicated region fallthrough
CT: control target
= control target key end

     0   :  { %14 = vsyncpa [#allocation3], 0  ;;  %s926_s30 = smov 0   ;;  %s1013_s0 = inlined_call_operand.vmem [shape: bf16[32,4], index: 0, kind: input, shape index: {}]   ;;  %s1014_s1 = inlined_call_operand.vmem [shape: bf16[4,64], index: 1, kind: input, shape index: {}]   ;;  %s1015_s2 = inlined_call_operand.vmem [shape: f32[1,64], index: 2, kind: input, shape index: {}]   ;;  %s1016_s3 = inlined_call_operand.hbm [shape: bf16[64,128], index: 3, kind: input, shape index: {}]   ;;  %s1017_s4 = inlined_call_operand.vmem [shape: f32[1,128], index: 4, kind: input, shape index: {}]   ;;  %s1018_s5 = inlined_call_operand.vmem [shape: bf16[128,128], index: 5, kind: input, shape index: {}]   ;;  %s1019_s6 = inlined_call_operand.vmem [shape: f32[1,128], index: 6, kind: input, shape index: {}]   ;;  %s1020_s7 = inlined_call_operand.vmem [shape: bf16[128,2], index: 7, kind: input, shape index: {}]   ;;  %s1021_s8 = inlined_call_operand.vmem [shape: f32[1,2], index: 8, kind: input, shape index: {}]   ;;  %s1022_s9 = inlined_call_operand.vmem [shape: f32[32,2], index: 9, kind: output, shape index: {}]  }
   0x1 LB: > { %s262_s12 = sshll.u32 %s1016_s3, 4  ;;  %s686_s13 = sadd.s32 4294967295, %s871_s30   ;;  %s871_s30 = sphi %s926_s30, %s20_s30   ;;  %s263_s12 = int_to_ptr.hbm [resolvable:$true] %s262_s12 }
   0x2   : > { %p688_p0 = scmp.ge.s32.totalorder %s871_s30, 1  ;;  %p245_p1 = scmp.lt.s32.totalorder %s871_s30, 3 }
   0x3   : > { %p814_p2 = scmp.eq.s32.totalorder %s686_s13, 0  ;;  %s873_s14 = smov [#allocation2]  }
   0x4   : > { %p246_p3 = pnand %p688_p0, %p245_p1  ;;  %s264_s15 = sshll.u32 %s873_s14, 4  ;;  %s265_s15 = int_to_ptr.vmem [resolvable:$true] %s264_s15 }
   0x5   : > { %s874_s16 = smov 64   ;;  %s875_s17 = smov 4  }
   0x6   : > { %p810_p4 = pneg %p246_p3  ;;  %304 = sbr.rel (%p246_p3) target bundleno = 588 (0x24c), region = 56 }
   0x8   : > { %p811_p5 = pnand %p814_p2, %p810_p4 }
   0xa   : > { %813 = dma.hbm_to_vmem [thread:$0]  (!%p811_p5), %s263_s12, 512, %s265_s15, [#allocation3], %s874_s16, %s874_s16, %s875_s17  }
   0xb   : > { %866 = dma.done.wait (%p814_p2), [#allocation3], 512  }
   0xc   : > { %868 = vsyncadd (%p814_p2), [#allocation3], 4294966784  ;;  %s693_s18 = sshll.u32 %s686_s13, 1  ;;  %vm370_vm0 = vcmask 1041408   ;;  %v356_v0 = vld [vmem:[%s1014_s1] sm:$0x3] }
   0xd   : > { %p342_p6 = scmp.lt.s32.totalorder %s693_s18, 3  ;;  %v372_v1 = vsel %vm370_vm0, %v356_v0, 0  ;;  %vm366_vm1 = vcmask 31744   ;;  %v789_v3 = vld [vmem:[#allocation2 + $0x18] sm:$0xff]  ;;  %v788_v4 = vld [vmem:[#allocation2 + $0x10] sm:$0xff]  ;;  %v787_v5 = vld [vmem:[#allocation2 + $0x8] sm:$0xff] }
   0xe   : > { %381 = vmatpush.bf16.msra.mxu0 %v372_v1  ;;  %435 = vmatpush.bf16.msra.mxu1 %v789_v3  ;;  %v786_v6 = vld [vmem:[#allocation2] sm:$0xff]  ;;  %v797_v7 = vld [vmem:[%s1018_s5 + $0x38] sm:$0xff]  ;;  %v796_v8 = vld [vmem:[%s1018_s5 + $0x30] sm:$0xff]  ;;  %vm427_vm2 = vcmask 523264   ;;  %vm615_vm3 = vcmask 15360  }
   0xf   : > { %s1024_s18 = smov (!%p342_p6, %s693_s18), 3  ;;  %516 = vmatpush.bf16.msra.mxu2 %v797_v7  ;;  %v795_v9 = vld [vmem:[%s1018_s5 + $0x28] sm:$0xff]  ;;  %v794_v10 = vld [vmem:[%s1018_s5 + $0x20] sm:$0xff]  ;;  %v793_v19 = vld [vmem:[%s1018_s5 + $0x18] sm:$0xff] }
  0x10   : > { %s694_s19 = sshll.u32 %s1024_s18, 2  ;;  %v827_v12 = vld [vmem:[%s1015_s2] ss:$0 sm:$0xff]  ;;  %v792_v20 = vld [vmem:[%s1018_s5 + $0x10] sm:$0xff]  ;;  %v791_v21 = vld [vmem:[%s1018_s5 + $0x8] sm:$0xff]  ;;  %s696_s25 = sshll.u32 %s1024_s18, 3 }
  0x11   : > { %s345_s22 = scalar_lea.vmem %s1013_s0, %s694_s19  ;;  %v790_v22 = vld [vmem:[%s1018_s5] sm:$0xff]  ;;  %v805_v23 = vld [vmem:[%s1020_s7 + $0x38] sm:$0xff]  ;;  %v804_v24 = vld [vmem:[%s1020_s7 + $0x30] sm:$0xff]  ;;  %s351_s10 = scalar_lea.vmem %s1022_s9, %s696_s25 }
  0x12   : > { %v785_v2 = vld [vmem:[%s345_s22] sm:$0xff]  ;;  %436 = vmatpush.bf16.msra.mxu1 %v788_v4  ;;  %601 = vmatpush.bf16.msra.mxu3 %v805_v23  ;;  %v803_v25 = vld [vmem:[%s1020_s7 + $0x28] sm:$0xff]  ;;  %v801_v35 = vld [vmem:[%s1020_s7 + $0x18] sm:$0xff] }
  0x13   : > { %701 = vmatmul.msk.bf16.vlgmr.msra.gmra.mxu0 %vm366_vm1, %v785_v2  ;;  %517 = vmatpush.bf16.msra.mxu2 %v796_v8  ;;  %v802_v26 = vld [vmem:[%s1020_s7 + $0x20] sm:$0xff]  ;;  %v800_v36 = vld [vmem:[%s1020_s7 + $0x10] sm:$0xff]  ;;  %v799_v37 = vld [vmem:[%s1020_s7 + $0x8] sm:$0xff] }
  0x14   : > { %v828_v28 = vld [vmem:[%s1017_s4] ss:$0 sm:$0xff] }
  0x15   : > { %v798_v38 = vld [vmem:[%s1020_s7] sm:$0xff] }
  0x16   : > { %437 = vmatpush.bf16.msra.mxu1 %v787_v5  ;;  %602 = vmatpush.bf16.msra.mxu3 %v804_v24  ;;  %v829_v40 = vld [vmem:[%s1019_s6] ss:$0 sm:$0xff] }
  0x17   : > { %518 = vmatpush.bf16.msra.mxu2 %v795_v9  ;;  %v830_v47 = vld [vmem:[%s1021_s8] ss:$0 sm:$0xff] }
  0x1a   : > { %438 = vmatpush.bf16.msra.mxu1 %v786_v6  ;;  %603 = vmatpush.bf16.msra.mxu3 %v803_v25 }
  0x1b   : > { %519 = vmatpush.bf16.msra.mxu2 %v794_v10 }
  0x1e   : > { %604 = vmatpush.bf16.msra.mxu3 %v802_v26 }
  0x1f   : > { %520 = vmatpush.bf16.msra.mxu2 %v793_v19 }
  0x22   : > { %605 = vmatpush.bf16.msra.mxu3 %v801_v35 }
  0x23   : > { %521 = vmatpush.bf16.msra.mxu2 %v792_v20 }
  0x26   : > { %606 = vmatpush.bf16.msra.mxu3 %v800_v36 }
  0x27   : > { %522 = vmatpush.bf16.msra.mxu2 %v791_v21 }
  0x2a   : > { %607 = vmatpush.bf16.msra.mxu3 %v799_v37 }
  0x2b   : > { %523 = vmatpush.bf16.msra.mxu2 %v790_v22 }
  0x2e   : > { %608 = vmatpush.bf16.msra.mxu3 %v798_v38 }
  0x90   : > { %v383_v11 = vpop.f32.mrf.mxu0 }
  0x91   : > { %v384_v13 = vadd.f32 %v827_v12, %v383_v11 }
  0x93   : > { %v388_v16 = vmax.f32 %v384_v13, 0.0 }
  0x98   : > { %v385_v14 = vpop.f32.mrf.mxu0 }
  0x99   : > { %v386_v15 = vadd.f32 %v827_v12, %v385_v14 }
  0x9b   : > { %v389_v17 = vmax.f32 %v386_v15, 0.0 }
  0x9d   : > { %v390_v18 = vpack.c.bf16 %v389_v17, %v388_v16 }
  0x9f   : > { %718 = vmatmul.msk.bf16.vlgmr.msra.gmra.mxu1 %vm427_vm2, %v390_v18 }
 0x11c   : > { %v440_v27 = vpop.f32.mrf.mxu1 }
 0x11d   : > { %v441_v29 = vadd.f32 %v828_v28, %v440_v27 }
 0x11f   : > { %v445_v32 = vmax.f32 %v441_v29, 0.0 }
 0x124   : > { %v442_v30 = vpop.f32.mrf.mxu1 }
 0x125   : > { %v443_v31 = vadd.f32 %v828_v28, %v442_v30 }
 0x127   : > { %v446_v33 = vmax.f32 %v443_v31, 0.0 }
 0x129   : > { %v447_v34 = vpack.c.bf16 %v446_v33, %v445_v32 }
 0x12b   : > { %524 = vmatmul.bf16.vlgmr.msra.gmra.mxu2 %v447_v34 }
 0x1ae   : > { %v525_v39 = vpop.f32.mrf.mxu2 }
 0x1af   : > { %v526_v41 = vadd.f32 %v829_v40, %v525_v39 }
 0x1b1   : > { %v530_v44 = vmax.f32 %v526_v41, 0.0 }
 0x1b6   : > { %v527_v42 = vpop.f32.mrf.mxu2 }
 0x1b7   : > { %v528_v43 = vadd.f32 %v829_v40, %v527_v42 }
 0x1b9   : > { %v531_v45 = vmax.f32 %v528_v43, 0.0 }
 0x1bb   : > { %v532_v46 = vpack.c.bf16 %v531_v45, %v530_v44 }
 0x1bd   : > { %609 = vmatmul.bf16.vlgmr.msra.gmra.mxu3 %v532_v46 }
 0x240   : > { %v610_v48 = vpop.f32.mrf.mxu3 }
 0x241   : > { %v611_v49 = vadd.f32 %v830_v47, %v610_v48 }
 0x243   : > { %616 = vst.msk [vmem:[%s351_s10] sm:$0xff] %vm615_vm3, %v611_v49 }
 0x248   : > { %v612_v50 = vpop.f32.mrf.mxu3 }
 0x249   : > { %v613_v51 = vadd.f32 %v830_v47, %v612_v50 }
 0x24b   : > { %617 = vst.msk [vmem:[%s351_s10 + $0x8] sm:$0xff] %vm615_vm3, %v613_v51 }
 0x24c PF: > { %s20_s30 = sadd.s32 1, %s871_s30  }
 0x24d   : > { %p17_p7 = scmp.ge.s32.totalorder %s20_s30, 4  }
 0x24f   :  { %19 = sbr.rel (!%p17_p7) target bundleno = 1 (0x1), region = 91 }
 0x254   :  { %640 = vsyncpa [#allocation3], 1 }
 0x255   :  { %642 = vsyncpa [#allocation3 + $0x1], 1 }

</bundles_post_ra>
